<compile_context>
chip_gen: v7x
topology: tpu7x:2x2x1
jax: 0.10.0
libtpu: 0.0.40
codegen_flags: <defaults>
</compile_context>

<pallas_src>
import functools

import jax
import jax.numpy as jnp
from jax import lax
from jax.experimental import pallas as pl
from jax.experimental.pallas import tpu as pltpu


def _round_up(x: int, m: int) -> int:
    return (x + m - 1) // m * m


def _vmem_capacity_bytes() -> int:
    try:
        return int(pltpu.get_tpu_info().vmem_capacity_bytes)
    except Exception:
        return 128 << 20          # v5e / v6e default; v7x reports 64 MiB


def _ising_bce_kernel(x_ref, wt_ref, params_ref, out_ref, *,
                      n_true, tile_n, needs_row_mask, needs_col_mask):
    """One batch tile -> (8, p_pad) partial BCE sums.

    x_ref      : (TILE_N, p_pad) X tile (zero padded)
    wt_ref     : (p_pad, p_pad)  raw_weights.T, grid-invariant
    params_ref : (8, p_pad) f32  row0=thresholds, row1=1/(row_abs+eps), row2=col mask
    out_ref    : (8, p_pad) f32  per-block partial sums (summed outside)
    """
    X = x_ref[...]
    thr = params_ref[0:1, :]                       # (1, p_pad)
    inv_row = params_ref[1:2, :]                   # (1, p_pad)

    # Canonical MXU orientation on raw weights; signed row-normalisation is a
    # lane-dense per-column scale of the logits (hoisted, loop-invariant).
    logits = jnp.dot(X, wt_ref[...], preferred_element_type=jnp.float32)
    logits = logits * inv_row + thr                # (TILE_N, p_pad)

    # binary_cross_entropy_with_logits(logits, X, reduction='none')
    y = X.astype(jnp.float32)
    bce = (jnp.maximum(logits, 0.0) - logits * y
           + jnp.log1p(jnp.exp(-jnp.abs(logits))))

    if needs_row_mask:
        # Only the last block can contain padded batch rows; a (TILE_N, 1)
        # compare is all-ones elsewhere and costs one broadcasted multiply.
        rows_left = n_true - pl.program_id(0) * tile_n
        row_ids = lax.broadcasted_iota(jnp.int32, (tile_n, 1), 0)
        bce = bce * (row_ids < rows_left).astype(jnp.float32)

    # Reduce the batch sublanes in groups of 8 (layout-preserving reshape) so
    # the per-block output stays an (8, p_pad)-tiled, lane-dense slab.
    p_pad = bce.shape[1]
    partial = jnp.sum(bce.reshape(tile_n // 8, 8, p_pad), axis=0)   # (8, p_pad)

    if needs_col_mask:
        partial = partial * params_ref[2:3, :]     # zero padded variable cols

    out_ref[...] = partial


@functools.partial(jax.jit, static_argnames=("tile_n", "compute_dtype"))
def directed_influence_ising_loss(X, raw_weights, thresholds,
                                  lambda_l1, lambda_l2,
                                  h_lambda_l1, h_lambda_l2,
                                  *, tile_n=None, compute_dtype=jnp.float32):
    """X: (N, p); raw_weights: (p, p); thresholds / penalty vectors: (p,)."""
    N, p = X.shape
    f32 = jnp.float32

    p_pad = _round_up(p, 128)                      # lane-dense variables axis
    itemsize = jnp.dtype(compute_dtype).itemsize

    # ---- Generation-aware VMEM budget & batch-tile selection ---------------
    capacity = _vmem_capacity_bytes()
    # ~48 MiB on v7x (64 MiB phys), ~100 MiB on v5e/v6e (128 MiB phys).
    vmem_limit = int(max(min(capacity - (16 << 20), 100 << 20), 32 << 20))

    wt_bytes = p_pad * p_pad * itemsize
    # Only request single-buffering when double-buffering Wt actually matters;
    # for small Wt the default pipelining is kept (zero risk, zero gain).
    single_buffer_wt = (2 * wt_bytes) > (8 << 20)
    wt_resident = wt_bytes if single_buffer_wt else 2 * wt_bytes

    fixed_bytes = wt_resident + 4 * 8 * p_pad * 4          # + params/out buffers
    per_row_bytes = 6 * p_pad * 4      # 2 X buffers + logits/bce temporaries
    avail = max(vmem_limit - fixed_bytes - (2 << 20), 8 * per_row_bytes)
    tile_cap = max(8, (avail // per_row_bytes) // 8 * 8)
    TILE_N = min(tile_cap, 2048, _round_up(N, 8))
    if tile_n is not None:
        TILE_N = max(8, min(_round_up(int(tile_n), 8), TILE_N))
    N_pad = _round_up(N, TILE_N)
    num_blocks = N_pad // TILE_N

    # ---- Operands (pad only when needed) ------------------------------------
    Xc = X.astype(compute_dtype)
    if (N_pad, p_pad) != (N, p):
        Xc = jnp.pad(Xc, ((0, N_pad - N), (0, p_pad - p)))
    Wf = raw_weights.astype(f32)
    Wt = Wf.T.astype(compute_dtype)
    if p_pad != p:
        Wt = jnp.pad(Wt, ((0, p_pad - p), (0, p_pad - p)))

    # Hoisted, loop-invariant per-row stats of W (also feed the penalties).
    row_abs = jnp.sum(jnp.abs(Wf), axis=1)          # (p,)
    inv_row = 1.0 / (row_abs + 1e-8)                # (p,)

    # Pack thresholds + inv_row + column-valid mask into one lane-dense block.
    params = jnp.zeros((8, p_pad), f32)
    params = params.at[0, :p].set(thresholds.astype(f32))
    params = params.at[1, :p].set(inv_row)
    params = params.at[2, :p].set(1.0)

    kernel = functools.partial(
        _ising_bce_kernel,
        n_true=N, tile_n=TILE_N,
        needs_row_mask=(N_pad != N),
        needs_col_mask=(p_pad != p))

    wt_spec_kwargs = {}
    if single_buffer_wt:
        wt_spec_kwargs["pipeline_mode"] = pl.Buffered(1)   # grid-invariant block

    grid_spec = pltpu.PrefetchScalarGridSpec(
        num_scalar_prefetch=0,
        grid=(num_blocks,),
        in_specs=[
            pl.BlockSpec((TILE_N, p_pad), lambda i: (i, 0)),            # X tiles
            pl.BlockSpec((p_pad, p_pad), lambda i: (0, 0),
                         **wt_spec_kwargs),                             # Wt resident
            pl.BlockSpec((8, p_pad), lambda i: (0, 0)),                 # params resident
        ],
        out_specs=pl.BlockSpec((8, p_pad), lambda i: (i, 0)),           # per-block partials
    )

    partials = pl.pallas_call(
        kernel,
        out_shape=jax.ShapeDtypeStruct((num_blocks * 8, p_pad), f32),
        grid_spec=grid_spec,
        compiler_params=pltpu.CompilerParams(
            dimension_semantics=("parallel",),       # batch blocks are independent
            vmem_limit_bytes=vmem_limit),
    )(Xc, Wt, params)

    # Final reduce + mean: static Python denominator (no int32 overflow).
    bce_mean = jnp.sum(partials) * (1.0 / float(N * p))

    # O(p) penalty terms, exact algebraic rewrite of the reference with
    # W = raw / (row_abs + eps), computed once from the hoisted stats.
    row_sq = jnp.sum(Wf * Wf, axis=1)
    l1_W = jnp.sum(lambda_l1.astype(f32) * row_abs * inv_row)
    l2_W = jnp.sum(lambda_l2.astype(f32) * row_sq * inv_row * inv_row)
    thr_f = thresholds.astype(f32)
    l1_h = jnp.sum(jnp.abs(thr_f) * h_lambda_l1.astype(f32))
    l2_h = jnp.sum(thr_f * thr_f * h_lambda_l2.astype(f32))

    return bce_mean + l1_W + l2_W + l1_h + l2_h


def _reference_loss(X, raw_weights, thresholds,
                    lambda_l1, lambda_l2, h_lambda_l1, h_lambda_l2):
    """Pure-JAX reference mirroring the PyTorch forward."""
    row_sum = jnp.sum(jnp.abs(raw_weights), axis=1, keepdims=True) + 1e-8
    W = raw_weights / row_sum
    logits = X @ W.T + thresholds
    bce = (jnp.maximum(logits, 0.0) - logits * X
           + jnp.log1p(jnp.exp(-jnp.abs(logits))))
    loss = jnp.mean(bce)
    l1_W = jnp.sum(jnp.abs(W) * lambda_l1[:, None])
    l2_W = jnp.sum(W ** 2 * lambda_l2[:, None])
    l1_h = jnp.sum(jnp.abs(thresholds) * h_lambda_l1)
    l2_h = jnp.sum(thresholds ** 2 * h_lambda_l2)
    return loss + l1_W + l2_W + l1_h + l2_h


if __name__ == "__main__":
    key = jax.random.PRNGKey(0)
    k_x, k_w = jax.random.split(key)

    N, p = 16, 32  # batch of 16 samples, 32 binary variables

    # Binary input data (the Ising model's BCE targets).
    X = (jax.random.uniform(k_x, (N, p)) < 0.5).astype(jnp.float32)

    # Deterministic parameter init matching the module's __init__:
    #   raw_weights ~ N(0, 1) * 0.1, thresholds = 0
    raw_weights = jax.random.normal(k_w, (p, p), dtype=jnp.float32) * 0.1
    thresholds = jnp.zeros((p,), dtype=jnp.float32)

    # Default regularisation hyperparameters (scalar -> repeated to length p).
    lambda_l1 = jnp.full((p,), 0.01, dtype=jnp.float32)
    lambda_l2 = jnp.zeros((p,), dtype=jnp.float32)
    h_lambda_l1 = jnp.zeros((p,), dtype=jnp.float32)
    h_lambda_l2 = jnp.zeros((p,), dtype=jnp.float32)

    out = directed_influence_ising_loss(
        X, raw_weights, thresholds,
        lambda_l1, lambda_l2, h_lambda_l1, h_lambda_l2)
    out = jax.block_until_ready(out)

    ref = _reference_loss(X, raw_weights, thresholds,
                          lambda_l1, lambda_l2, h_lambda_l1, h_lambda_l2)
    # Tolerance covers MXU default-precision rounding: the kernel scales the
    # raw-weight matmul by inv_row, the reference matmuls pre-normalised W
    # (mathematically identical, slightly different rounding).
    assert jnp.allclose(out, ref, rtol=1e-3, atol=1e-3), (out, ref)

    print("KERNEL_OK")
</pallas_src>

<mosaic_0001>
module attributes {stable_mosaic.version = 11 : i64} {
  func.func @_ising_bce_kernel(%arg0: i32, %arg1: memref<16x128xf32, #tpu.memory_space<vmem>>, %arg2: memref<128x128xf32, #tpu.memory_space<vmem>>, %arg3: memref<8x128xf32, #tpu.memory_space<vmem>>, %arg4: memref<8x128xf32, #tpu.memory_space<vmem>>) attributes {dimension_semantics = [#tpu.dimension_semantics<parallel>], iteration_bounds = array<i64: 1>, scalar_prefetch = 0 : i64, scratch_operands = 0 : i64, tpu.core_type = #tpu.core_type<tc>, window_params = [{transform_indices = @transform_0, window_bounds = array<i64: 16, 128>}, {pipeline_mode = #tpu.pipeline_mode<synchronous>, transform_indices = @transform_1, window_bounds = array<i64: 128, 128>}, {pipeline_mode = #tpu.pipeline_mode<synchronous>, transform_indices = @transform_2, window_bounds = array<i64: 8, 128>}, {transform_indices = @transform_3, window_bounds = array<i64: 8, 128>}]} {
    %c0 = arith.constant 0 : index
    %c0_0 = arith.constant 0 : index
    %0 = vector.load %arg1[%c0, %c0_0] : memref<16x128xf32, #tpu.memory_space<vmem>>, vector<16x128xf32>
    %c0_1 = arith.constant 0 : index
    %c0_2 = arith.constant 0 : index
    %1 = vector.load %arg3[%c0_1, %c0_2] : memref<8x128xf32, #tpu.memory_space<vmem>>, vector<1x128xf32>
    %c1 = arith.constant 1 : index
    %c0_3 = arith.constant 0 : index
    %2 = vector.load %arg3[%c1, %c0_3] : memref<8x128xf32, #tpu.memory_space<vmem>>, vector<1x128xf32>
    %c0_4 = arith.constant 0 : index
    %c0_5 = arith.constant 0 : index
    %3 = vector.load %arg2[%c0_4, %c0_5] : memref<128x128xf32, #tpu.memory_space<vmem>>, vector<128x128xf32>
    %cst = arith.constant dense<0.000000e+00> : vector<16x128xf32>
    %4 = tpu.matmul %0, %3, %cst {dimension_numbers = #tpu.dot_dimension_numbers<[1], [0], [0], [1], [0, 0, 1, 1], [], []>} : vector<16x128xf32>, vector<128x128xf32>, vector<16x128xf32> -> vector<16x128xf32>
    %5 = vector.broadcast %2 : vector<1x128xf32> to vector<16x128xf32>
    %6 = arith.mulf %4, %5 : vector<16x128xf32>
    %7 = vector.broadcast %1 : vector<1x128xf32> to vector<16x128xf32>
    %8 = arith.addf %6, %7 : vector<16x128xf32>
    %cst_6 = arith.constant 0.000000e+00 : f32
    %9 = vector.broadcast %cst_6 : f32 to vector<16x128xf32>
    %10 = arith.maximumf %8, %9 : vector<16x128xf32>
    %11 = arith.mulf %8, %0 : vector<16x128xf32>
    %12 = arith.subf %10, %11 : vector<16x128xf32>
    %13 = math.absf %8 : vector<16x128xf32>
    %cst_7 = arith.constant 0.000000e+00 : f32
    %14 = vector.broadcast %cst_7 : f32 to vector<16x128xf32>
    %15 = arith.subf %14, %13 : vector<16x128xf32>
    %16 = math.exp %15 : vector<16x128xf32>
    %17 = math.log1p %16 : vector<16x128xf32>
    %18 = arith.addf %12, %17 : vector<16x128xf32>
    %19 = vector.shape_cast %18 : vector<16x128xf32> to vector<2x8x128xf32>
    %cst_8 = arith.constant dense<0.000000e+00> : vector<8x128xf32>
    %20 = vector.multi_reduction <add>, %19, %cst_8 [0] : vector<2x8x128xf32> to vector<8x128xf32>
    %c2 = arith.constant 2 : index
    %c0_9 = arith.constant 0 : index
    %21 = vector.load %arg3[%c2, %c0_9] : memref<8x128xf32, #tpu.memory_space<vmem>>, vector<1x128xf32>
    %22 = vector.broadcast %21 : vector<1x128xf32> to vector<8x128xf32>
    %23 = arith.mulf %20, %22 : vector<8x128xf32>
    %c0_10 = arith.constant 0 : index
    %c0_11 = arith.constant 0 : index
    %24 = vector.load %arg4[%c0_10, %c0_11] : memref<8x128xf32, #tpu.memory_space<vmem>>, vector<8x128xf32>
    tpu.vector_store %arg4[%c0_10, %c0_11], %23 {strides = array<i32>} : memref<8x128xf32, #tpu.memory_space<vmem>>, vector<8x128xf32>,
    return
  }
  func.func @transform_0(%arg0: i32) -> (i32, i32) {
    %c0_i32 = arith.constant 0 : i32
    %c0_i32_0 = arith.constant 0 : i32
    return %arg0, %c0_i32 : i32, i32
  }
  func.func @transform_1(%arg0: i32) -> (i32, i32) {
    %c0_i32 = arith.constant 0 : i32
    %c0_i32_0 = arith.constant 0 : i32
    %c0_i32_1 = arith.constant 0 : i32
    return %c0_i32, %c0_i32_0 : i32, i32
  }
  func.func @transform_2(%arg0: i32) -> (i32, i32) {
    %c0_i32 = arith.constant 0 : i32
    %c0_i32_0 = arith.constant 0 : i32
    %c0_i32_1 = arith.constant 0 : i32
    return %c0_i32, %c0_i32_0 : i32, i32
  }
  func.func @transform_3(%arg0: i32) -> (i32, i32) {
    %c0_i32 = arith.constant 0 : i32
    %c0_i32_0 = arith.constant 0 : i32
    return %arg0, %c0_i32 : i32, i32
  }
}

</mosaic_0001>

<bundles_post_ra>
// kernel: directed_influence_ising_loss.1
= control target key start
LH: loop header
LB: loop body
LE: loop exit
PB: predicated region body
PF: predicated region fallthrough
CT: control target
= control target key end

     0   :  { %8 = vsyncpa [#allocation3], 0  ;;  %s496_s0 = inlined_call_operand.hbm [shape: f32[16,128], index: 0, kind: input, shape index: {}]   ;;  %s497_s1 = inlined_call_operand.hbm [shape: f32[128,128], index: 1, kind: input, shape index: {}]   ;;  %s498_s2 = inlined_call_operand.hbm [shape: f32[8,128], index: 2, kind: input, shape index: {}]   ;;  %s499_s3 = inlined_call_operand.hbm [shape: f32[8,128], index: 3, kind: output, shape index: {}]  }
   0x1   :  { %9 = vsyncpa [#allocation6], 0 }
   0x2   :  { %10 = vsyncpa [#allocation4], 0  ;;  %s415_s12 = smov [#allocation5]   ;;  %s416_s14 = smov [#allocation2]  }
   0x3   :  { %s28_s13 = sshll.u32 %s415_s12, 4  ;;  %s16_s15 = sshll.u32 %s416_s14, 4  ;;  %s29_s13 = int_to_ptr.vmem [resolvable:$true] %s28_s13  ;;  %s441_s15 = int_to_ptr.vmem [resolvable:$true] %s16_s15 }
   0x4   :  { %s321_s18 = scalar_lea.hbm %s497_s1, 2048 }
   0x5   :  { %p322_p0 = scmp.ne.s32.totalorder %s497_s1, %s321_s18  ;;  %p325_p1 = scmp.lt.u32.totalorder %s321_s18, %s497_s1 }
   0x7   :  { %p327_p2 = pnand %p325_p1, %p322_p0 }
   0x9   :  { %330 = shalt.err (!%p327_p2)
}
   0xa   :  { %s331_s23 = scalar_lea.vmem %s29_s13, 2048  ;;  %p336_p4 = scmp.lt.s32.totalorder %s29_s13, %s29_s13 }
   0xb   :  { %p332_p3 = scmp.ne.s32.totalorder %s29_s13, %s331_s23  ;;  %p337_p5 = scmp.lt.s32.totalorder %s331_s23, %s331_s23 }
   0xd   :  { %p338_p6 = por %p337_p5, %p336_p4 }
   0xf   :  { %p339_p7 = pnand %p338_p6, %p332_p3 }
  0x11   :  { %342 = shalt.err (!%p339_p7)
}
  0x12   :  { %s417_s24 = smov 128   ;;  %s418_s25 = smov 8  }
  0x13   :  { %34 = dma.hbm_to_vmem [thread:$0]  %s497_s1, 2048, %s29_s13, [#allocation6], %s417_s24, %s417_s24, %s418_s25  }
  0x14   :  { %s343_s30 = scalar_lea.hbm %s496_s0, 256 }
  0x15   :  { %p344_p8 = scmp.ne.s32.totalorder %s496_s0, %s343_s30  ;;  %p347_p9 = scmp.lt.u32.totalorder %s343_s30, %s496_s0 }
  0x17   :  { %p349_p10 = pnand %p347_p9, %p344_p8 }
  0x19   :  { %352 = shalt.err (!%p349_p10)
}
  0x1a   :  { %s353_s8 = scalar_lea.vmem %s441_s15, 256  ;;  %p358_p12 = scmp.lt.s32.totalorder %s441_s15, %s441_s15 }
  0x1b   :  { %p354_p11 = scmp.ne.s32.totalorder %s441_s15, %s353_s8  ;;  %p359_p13 = scmp.lt.s32.totalorder %s353_s8, %s353_s8 }
  0x1d   :  { %p360_p0 = por %p359_p13, %p358_p12 }
  0x1f   :  { %p361_p1 = pnand %p360_p0, %p354_p11 }
  0x21   :  { %364 = shalt.err (!%p361_p1)
}
  0x22   :  { %22 = dma.hbm_to_vmem [thread:$0]  %s496_s0, 256, %s441_s15, [#allocation3], %s417_s24, %s417_s24, %s418_s25  }
  0x23   :  { %s419_s10 = smov [#allocation7]   ;;  %s365_s14 = scalar_lea.hbm %s498_s2, 128 }
  0x24   :  { %s41_s11 = sshll.u32 %s419_s10, 4  ;;  %p366_p2 = scmp.ne.s32.totalorder %s498_s2, %s365_s14  ;;  %s42_s11 = int_to_ptr.vmem [resolvable:$true] %s41_s11 }
  0x25   :  { %p369_p3 = scmp.lt.u32.totalorder %s365_s14, %s498_s2 }
  0x27   :  { %p371_p4 = pnand %p369_p3, %p366_p2 }
  0x29   :  { %374 = shalt.err (!%p371_p4)
}
  0x2a   :  { %s375_s20 = scalar_lea.vmem %s42_s11, 128  ;;  %p380_p6 = scmp.lt.s32.totalorder %s42_s11, %s42_s11 }
  0x2b   :  { %p376_p5 = scmp.ne.s32.totalorder %s42_s11, %s375_s20  ;;  %p381_p7 = scmp.lt.s32.totalorder %s375_s20, %s375_s20 }
  0x2d   :  { %p382_p8 = por %p381_p7, %p380_p6 }
  0x2f   :  { %p383_p9 = pnand %p382_p8, %p376_p5 }
  0x31   :  { %386 = shalt.err (!%p383_p9)
}
  0x32   :  { %44 = dma.hbm_to_vmem [thread:$0]  %s498_s2, 128, %s42_s11, [#allocation6]  }
  0x33   :  { %409 = dma.done.wait [#allocation3], 256  }
  0x34   :  { %410 = vsyncadd [#allocation3], 4294967040 }
  0x35   :  { %411 = dma.done.wait [#allocation6], 2176  }
  0x36   :  { %412 = vsyncadd [#allocation6], 4294965120  ;;  %v58_v0 = vld [vmem:[#allocation5] sm:$0xff]  ;;  %v59_v1 = vld [vmem:[#allocation5 + $0x8] sm:$0xff]  ;;  %s420_s2 = smov [#allocation8]  }
  0x37   :  { %v60_v2 = vld [vmem:[#allocation5 + $0x10] sm:$0xff]  ;;  %v275_v3 = vpack.c.bf16 %v59_v1, %v58_v0  ;;  %v61_v4 = vld [vmem:[#allocation5 + $0x18] sm:$0xff]  ;;  %v62_v6 = vld [vmem:[#allocation5 + $0x20] sm:$0xff]  ;;  %s209_s21 = sshll.u32 %s420_s2, 4  ;;  %s210_s21 = int_to_ptr.vmem [resolvable:$true] %s209_s21 }
  0x38   :  { %v279_v5 = vpack.c.bf16 %v61_v4, %v60_v2  ;;  %v63_v7 = vld [vmem:[#allocation5 + $0x28] sm:$0xff]  ;;  %v54_v9 = vld [vmem:[#allocation2] sm:$0xff]  ;;  %v65_v11 = vld [vmem:[#allocation5 + $0x38] sm:$0xff]  ;;  %s387_s22 = scalar_lea.vmem %s210_s21, 128  ;;  %p392_p11 = scmp.lt.s32.totalorder %s210_s21, %s210_s21 }
  0x39   :  { %276 = vmatprep.subr.bf16.mxu0 %v275_v3  ;;  %v283_v8 = vpack.c.bf16 %v63_v7, %v62_v6  ;;  %v64_v10 = vld [vmem:[#allocation5 + $0x30] sm:$0xff]  ;;  %272 = vmatprep.mubr.f32.mxu0 %v54_v9  ;;  %v66_v13 = vld [vmem:[#allocation5 + $0x40] sm:$0xff]  ;;  %v67_v14 = vld [vmem:[#allocation5 + $0x48] sm:$0xff]  ;;  %p388_p10 = scmp.ne.s32.totalorder %s210_s21, %s387_s22  ;;  %p393_p12 = scmp.lt.s32.totalorder %s387_s22, %s387_s22 }
  0x3a   :  { %278 = vmatpush3.bf16.msra.mxu0 %v275_v3  ;;  %v287_v12 = vpack.c.bf16 %v65_v11, %v64_v10  ;;  %v291_v15 = vpack.c.bf16 %v67_v14, %v66_v13  ;;  %v68_v16 = vld [vmem:[#allocation5 + $0x50] sm:$0xff]  ;;  %v69_v17 = vld [vmem:[#allocation5 + $0x58] sm:$0xff]  ;;  %v70_v19 = vld [vmem:[#allocation5 + $0x60] sm:$0xff] }
  0x3b   :  { %280 = vmatprep.subr.bf16.mxu0 %v279_v5  ;;  %v295_v18 = vpack.c.bf16 %v69_v17, %v68_v16  ;;  %v71_v20 = vld [vmem:[#allocation5 + $0x68] sm:$0xff]  ;;  %v72_v22 = vld [vmem:[#allocation5 + $0x70] sm:$0xff]  ;;  %v73_v23 = vld [vmem:[#allocation5 + $0x78] sm:$0xff]  ;;  %p394_p13 = por %p393_p12, %p392_p11 }
  0x3c   :  { %v299_v21 = vpack.c.bf16 %v71_v20, %v70_v19  ;;  %v303_v24 = vpack.c.bf16 %v73_v23, %v72_v22  ;;  %v55_v25 = vld [vmem:[#allocation2 + $0x8] sm:$0xff]  ;;  %v219_v26 = vld [vmem:[#allocation7 + $0x1] ss:$0 sm:$0xff]  ;;  %v220_v27 = vld [vmem:[#allocation7] ss:$0 sm:$0xff] }
  0x3d   :  { %v221_v2 = vld [vmem:[#allocation7 + $0x2] ss:$0 sm:$0xff]  ;;  %p395_p0 = pnand %p394_p13, %p388_p10 }
  0x3e   :  { %282 = vmatpush3.bf16.msra.mxu0 %v279_v5 }
  0x3f   :  { %284 = vmatprep.subr.bf16.mxu0 %v283_v8 }
  0x42   :  { %286 = vmatpush3.bf16.msra.mxu0 %v283_v8 }
  0x43   :  { %288 = vmatprep.subr.bf16.mxu0 %v287_v12 }
  0x46   :  { %290 = vmatpush3.bf16.msra.mxu0 %v287_v12 }
  0x47   :  { %292 = vmatprep.subr.bf16.mxu0 %v291_v15 }
  0x4a   :  { %294 = vmatpush3.bf16.msra.mxu0 %v291_v15 }
  0x4b   :  { %296 = vmatprep.subr.bf16.mxu0 %v295_v18 }
  0x4e   :  { %298 = vmatpush3.bf16.msra.mxu0 %v295_v18 }
  0x4f   :  { %300 = vmatprep.subr.bf16.mxu0 %v299_v21 }
  0x52   :  { %302 = vmatpush3.bf16.msra.mxu0 %v299_v21 }
  0x53   :  { %304 = vmatprep.subr.bf16.mxu0 %v303_v24 }
  0x56   :  { %306 = vmatpush3.bf16.msra.mxu0 %v303_v24 }
  0x59   :  { %273 = vmatmul.mubr.f32.vlgmr.msra.gmra.mrb[0].mxu0 %v55_v25 }
 0x12c   :  { %v274_v28 = vpop.f32.mrb[0].mxu0 }
 0x12d   :  { %v154_v29 = vmul.f32 %v274_v28, %v219_v26  ;;  %v140_v30 = vpop.f32.mrb[1].mxu0 }
 0x12e   :  { %v153_v31 = vmul.f32 %v219_v26, %v140_v30 }
 0x12f   :  { %v160_v32 = vadd.f32 %v220_v27, %v154_v29 }
 0x130   :  { %v159_v33 = vadd.f32 %v220_v27, %v153_v31 }
 0x131   :  { %v168_v34 = vand.u32 2147483647, %v160_v32  ;;  %v162_v47 = vmax.f32 %v160_v32, 0.0  ;;  %v164_v48 = vmul.f32 %v160_v32, %v55_v25 }
 0x132   :  { %v167_v35 = vand.u32 2147483647, %v159_v33  ;;  %v161_v51 = vmax.f32 %v159_v33, 0.0  ;;  %v163_v52 = vmul.f32 %v159_v33, %v54_v9 }
 0x133   :  { %v170_v36 = vsub.f32 0.0, %v168_v34  ;;  %v166_v58 = vsub.f32 %v162_v47, %v164_v48 }
 0x134   :  { %v169_v37 = vsub.f32 0.0, %v167_v35  ;;  %v165_v61 = vsub.f32 %v161_v51, %v163_v52 }
 0x135   :  { %v173_v38 = vmul.f32 1.442695, %v170_v36 }
 0x136   :  { %v171_v39 = vmul.f32 1.442695, %v169_v37 }
 0x137   :  { %313 = vpow2.f32 %v173_v38 }
 0x138   :  { %315 = vpow2.f32 %v171_v39 }
 0x141   :  { %v314_v40 = vpop.eup %313 }
 0x142   :  { %v316_v41 = vpop.eup %315  ;;  %v184_v42 = vadd.f32 1.0, %v314_v40  ;;  %v187_v44 = vmul.f32 -0.5, %v314_v40  ;;  %v190_v50 = vand.u32 2147483647, %v314_v40 }
 0x143   :  { %v175_v43 = vadd.f32 1.0, %v316_v41  ;;  %v178_v45 = vmul.f32 -0.5, %v316_v41  ;;  %v181_v53 = vand.u32 2147483647, %v316_v41 }
 0x144   :  { %317 = vlog2.f32 %v184_v42  ;;  %v188_v46 = vadd.f32 1.0, %v187_v44  ;;  %vm191_vm0 = vcmp.lt.f32.partialorder %v190_v50, 0.0004427343 }
 0x145   :  { %319 = vlog2.f32 %v175_v43  ;;  %v179_v49 = vadd.f32 1.0, %v178_v45  ;;  %vm182_vm1 = vcmp.lt.f32.partialorder %v181_v53, 0.0004427343 }
 0x146   :  { %v189_v57 = vmul.f32 %v314_v40, %v188_v46 }
 0x147   :  { %v180_v60 = vmul.f32 %v316_v41, %v179_v49 }
 0x14e   :  { %v318_v54 = vpop.eup %317 }
 0x14f   :  { %v320_v55 = vpop.eup %319  ;;  %v186_v56 = vmul.f32 0.6931472, %v318_v54 }
 0x150   :  { %v177_v59 = vmul.f32 0.6931472, %v320_v55 }
 0x151   :  { %v192_v62 = vsel %vm191_vm0, %v189_v57, %v186_v56 }
 0x152   :  { %v183_v63 = vsel %vm182_vm1, %v180_v60, %v177_v59  ;;  %v194_v0 = vadd.f32 %v192_v62, %v166_v58 }
 0x153   :  { %v193_v1 = vadd.f32 %v183_v63, %v165_v61 }
 0x155   :  { %v195_v3 = vadd.f32 %v194_v0, %v193_v1 }
 0x157   :  { %v201_v4 = vmul.f32 %v221_v2, %v195_v3 }
 0x159   :  { %202 = vst [vmem:[#allocation8] sm:$0xff] %v201_v4 }
 0x15a   :  { %398 = shalt.err (!%p395_p0)
}
 0x15b   :  { %s399_s25 = scalar_lea.hbm %s499_s3, 128 }
 0x15c   :  { %p400_p1 = scmp.ne.s32.totalorder %s499_s3, %s399_s25  ;;  %p403_p2 = scmp.lt.u32.totalorder %s399_s25, %s499_s3 }
 0x15e   :  { %p405_p3 = pnand %p403_p2, %p400_p1 }
 0x160   :  { %408 = shalt.err (!%p405_p3)
}
 0x161   :  { %212 = dma.vmem_to_hbm [thread:$0]  %s210_s21, 128, %s499_s3, [#allocation4]  }
 0x162   :  { %413 = dma.done.wait [#allocation4], 128  }
 0x163   :  { %414 = vsyncadd [#allocation4], 4294967168 }
 0x164   :  { %216 = vsyncpa [#allocation3], 1 }
 0x165   :  { %217 = vsyncpa [#allocation6], 1 }
 0x166   :  { %218 = vsyncpa [#allocation4], 1 }

</bundles_post_ra>
